<compile_context>
chip_gen: v6e
topology: v6e:2x2x1
jax: 0.10.0
libtpu: 0.0.40
codegen_flags: <defaults>
</compile_context>

<pallas_src>
import functools

import jax
import jax.numpy as jnp
from jax.experimental import pallas as pl
from jax.experimental.pallas import tpu as pltpu

HWGQ_STEPS = {
    1: 1.0576462792297525,
    2: 0.6356366866203315,
    3: 0.3720645813370479,
    4: 0.21305606790772952,
    8: 0.020300567823662602,
    16: 9.714825915156693e-05,
}


def _round_up(v, m):
    return (v + m - 1) // m * m


def _pick_tile(total, max_tile, align):
    """Largest tile <= max_tile (multiple of `align`) that keeps padding minimal."""
    t_al = _round_up(max(total, 1), align)
    n_tiles = pl.cdiv(t_al, max_tile)
    return _round_up(pl.cdiv(t_al, n_tiles), align)


def _sublane_align(dtype):
    itemsize = jnp.dtype(dtype).itemsize
    return {1: 32, 2: 16}.get(itemsize, 8)


def _device_kind():
    try:
        return jax.devices()[0].device_kind.lower()
    except Exception:
        return ""


def _default_code_dtype(bit):
    if bit > 8:
        return jnp.float32  # codes no longer exact in bf16/int8
    kind = _device_kind()
    # v4/v5/v6-class MXUs have a native int8 path; activation codes (0..2^bit-1) fit
    # int8 for bit <= 7, weight codes for bit <= 8.
    if bit <= 7 and any(tag in kind for tag in ("v4", "v5", "v6")):
        return jnp.int8
    # TODO(synk): fp8 e4m3 code path for bit <= 4 on v7x (no int MXU on that generation).
    return jnp.bfloat16


def _pick_vmem_limit():
    kind = _device_kind()
    if ("v5" in kind) or ("v6" in kind):
        return 96 * 1024 * 1024       # 128 MiB physical VMEM on v5e/v6e
    return 48 * 1024 * 1024           # safe on v7x (64 MiB physical per TC)


# --------------------------------------------------------------------------------------
# HWGQ activation quantization (the spec module) as an elementwise Pallas kernel.
# codes = round(clamp(x, 0, step*(2^bit-1)) / step); HWGQ forward output = codes * step.
# --------------------------------------------------------------------------------------
def _hwgq_kernel(x_ref, o_ref, *, step, clip_thr, out_scale, out_is_int):
    x = x_ref[...]
    y = jnp.clip(x, 0.0, clip_thr)
    codes = jnp.round(y * (1.0 / step))
    if out_scale is not None:
        o_ref[...] = (codes * out_scale).astype(o_ref.dtype)
    elif out_is_int:
        o_ref[...] = codes.astype(jnp.int32).astype(o_ref.dtype)
    else:
        o_ref[...] = codes.astype(o_ref.dtype)


_HWGQ_LANES = 512        # lane-dense slab width (multiple of 128)
_HWGQ_MAX_ROWS = 1024    # max tile rows -> ~2 MiB f32 input tile, ~6 MiB double-buffered


def _hwgq_pallas(x, *, bit, out_dtype, out_scale=None):
    """Elementwise HWGQ quantization over any-shaped f32 x.

    out_scale=None  -> integer codes in `out_dtype` (bf16 / int8 / f32).
    out_scale=step  -> module forward output (codes * step) in `out_dtype`.
    """
    step = HWGQ_STEPS[bit]
    clip_thr = step * float(2 ** bit - 1)

    orig_shape = x.shape
    L = x.size
    lanes = _HWGQ_LANES
    sub = max(8, _sublane_align(out_dtype))

    R = pl.cdiv(L, lanes)
    R_al = _round_up(R, sub)
    n_tiles = pl.cdiv(R_al, _HWGQ_MAX_ROWS)
    tr = _round_up(pl.cdiv(R_al, n_tiles), sub)
    Rp = tr * n_tiles

    pad = Rp * lanes - L
    xf = jnp.pad(x.reshape(-1), (0, pad)).reshape(Rp, lanes)

    out_is_int = jnp.issubdtype(jnp.dtype(out_dtype), jnp.integer)

    out = pl.pallas_call(
        functools.partial(_hwgq_kernel, step=step, clip_thr=clip_thr,
                          out_scale=out_scale, out_is_int=out_is_int),
        out_shape=jax.ShapeDtypeStruct((Rp, lanes), out_dtype),
        grid_spec=pltpu.PrefetchScalarGridSpec(
            num_scalar_prefetch=0,
            grid=(n_tiles,),
            in_specs=[pl.BlockSpec((tr, lanes), lambda i: (i, 0))],
            out_specs=pl.BlockSpec((tr, lanes), lambda i: (i, 0)),
        ),
        compiler_params=pltpu.CompilerParams(
            dimension_semantics=("parallel",),
            vmem_limit_bytes=32 * 1024 * 1024,
        ),
    )(xf)

    return out.reshape(-1)[:L].reshape(orig_shape)


def hwgq_forward(x, *, bit=2):
    """HWGQ module forward: y = round(clamp(x, 0, step*(2^bit-1)) / step) * step."""
    if bit >= 32:
        # TODO(synk): bit == 32 PReLU branch of the PyTorch HWGQ module not implemented.
        raise NotImplementedError("bit == 32 (PReLU) branch not implemented")
    step = HWGQ_STEPS[bit]
    return _hwgq_pallas(x, bit=bit, out_dtype=jnp.float32, out_scale=step)


# --------------------------------------------------------------------------------------
# Quantized conv-as-matmul kernels: integer-code MXU matmul + per-output-channel scale.
# --------------------------------------------------------------------------------------
def _qconv_kernel_1k(a_ref, w_ref, sc_ref, o_ref, *, acc_dtype):
    # Single K block: no accumulator scratch, no init/finalize.
    d = jnp.dot(a_ref[...], w_ref[...], preferred_element_type=acc_dtype)
    o_ref[...] = d.astype(jnp.float32) * sc_ref[...]


def _qconv_kernel_multik(a_ref, w_ref, sc_ref, o_ref, *, acc_dtype):
    # Multi-K fallback: accumulate directly into the f32 output block.
    k = pl.program_id(2)
    d = jnp.dot(a_ref[...], w_ref[...], preferred_element_type=acc_dtype)
    d = d.astype(jnp.float32)

    @pl.when(k == 0)
    def _():
        o_ref[...] = d

    @pl.when(k > 0)
    def _():
        o_ref[...] += d

    @pl.when(k == pl.num_programs(2) - 1)
    def _():
        o_ref[...] = o_ref[...] * sc_ref[...]


def qaconv2d_forward(x, weight, s_per_channel, *, bit=2, stride=1, padding=1,
                     out_layout="NHWC", code_dtype=None,
                     tm_max=1024, tc_max=512, tk_max=2048):
    """QAConv2d forward (no bias).

    x: (N, Cin, H, W) f32; weight: (Cout, Cin, kh, kw) f32; s_per_channel: (Cout,) f32.
    Returns (N, Ho, Wo, Cout) f32 by default (out_layout="NHWC"), or NCHW on request.
    """
    N, Cin, H, W = x.shape
    Cout, _, kh, kw = weight.shape
    Ho = (H + 2 * padding - kh) // stride + 1
    Wo = (W + 2 * padding - kw) // stride + 1

    step = HWGQ_STEPS[bit]
    thd_neg = float(-(2 ** (bit - 1)))
    thd_pos = float(2 ** (bit - 1) - 1)

    if code_dtype is None:
        code_dtype = _default_code_dtype(bit)
    code_is_int = jnp.issubdtype(jnp.dtype(code_dtype), jnp.integer)
    acc_dtype = jnp.int32 if code_is_int else jnp.float32

    # --- 1) HWGQ activation quantization to compact codes, BEFORE im2col ---
    x_codes = _hwgq_pallas(x, bit=bit, out_dtype=code_dtype)

    # --- 2) LSQ per-channel weight quantization to codes (hoisted, runs once) ---
    s = s_per_channel.reshape(Cout, 1, 1, 1)
    w_codes_f = jnp.round(jnp.clip(weight / s, thd_neg, thd_pos))
    if code_is_int:
        w_codes = w_codes_f.astype(jnp.int32).astype(code_dtype)
    else:
        w_codes = w_codes_f.astype(code_dtype)
    col_scale = (step * s_per_channel).astype(jnp.float32)  # applied post-matmul

    # --- 3) im2col on the compact codes; column order matches weight.reshape(Cout, K) ---
    # TODO(synk): fuse im2col into the matmul kernel via manual row-band DMAs
    # (memory_space=pl.ANY + pltpu.make_async_copy over a channels-last input) so the
    # kh*kw-expanded patch matrix is never materialized in HBM.
    xp = jnp.pad(x_codes, ((0, 0), (0, 0), (padding, padding), (padding, padding)))
    cols = []
    for i in range(kh):
        for j in range(kw):
            cols.append(xp[:, :, i:i + stride * Ho:stride, j:j + stride * Wo:stride])
    patches = jnp.stack(cols, axis=0).reshape(kh, kw, N, Cin, Ho, Wo)
    patches = patches.transpose(2, 4, 5, 3, 0, 1).reshape(N * Ho * Wo, Cin * kh * kw)

    M, K = patches.shape

    # --- tile sizes: minimal padding, dtype-aware sublane alignment ---
    sub_m = _sublane_align(code_dtype)
    tm = _pick_tile(M, tm_max, sub_m)
    tc = _pick_tile(Cout, tc_max, 128)
    M_pad = _round_up(_round_up(M, sub_m), tm)
    C_pad = _round_up(_round_up(Cout, 128), tc)

    # Keep >= 2 parallel tiles so v7x's second TensorCore is not idle on small layers.
    if (M_pad // tm) * (C_pad // tc) < 2 and tm >= 2 * sub_m:
        tm = _round_up(tm // 2, sub_m)
        M_pad = _round_up(_round_up(M, sub_m), tm)

    K128 = _round_up(K, 128)
    nk = pl.cdiv(K128, tk_max)
    tk = _round_up(pl.cdiv(K128, nk), 128)
    K_pad = tk * nk

    # Only the tiny K axis needs zero-fill for reduction correctness; M/Cout pads are
    # sliced off.  jnp.pad (no zeros().at[].set() round-trips).
    patches_p = jnp.pad(patches, ((0, M_pad - M), (0, K_pad - K)))
    wt_p = jnp.pad(w_codes.reshape(Cout, K).T, ((0, K_pad - K), (0, C_pad - Cout)))
    sc_p = jnp.pad(col_scale.reshape(1, Cout), ((0, 0), (0, C_pad - Cout)))

    vmem_limit = _pick_vmem_limit()

    if nk == 1:
        out_p = pl.pallas_call(
            functools.partial(_qconv_kernel_1k, acc_dtype=acc_dtype),
            out_shape=jax.ShapeDtypeStruct((M_pad, C_pad), jnp.float32),
            grid_spec=pltpu.PrefetchScalarGridSpec(
                num_scalar_prefetch=0,
                grid=(M_pad // tm, C_pad // tc),
                in_specs=[
                    pl.BlockSpec((tm, K_pad), lambda i, j: (i, 0)),   # activation codes
                    pl.BlockSpec((K_pad, tc), lambda i, j: (0, j)),   # weight codes
                    pl.BlockSpec((1, tc), lambda i, j: (0, j)),       # per-channel scales
                ],
                out_specs=pl.BlockSpec((tm, tc), lambda i, j: (i, j)),
            ),
            compiler_params=pltpu.CompilerParams(
                dimension_semantics=("parallel", "parallel"),
                vmem_limit_bytes=vmem_limit,
            ),
        )(patches_p, wt_p, sc_p)
    else:
        out_p = pl.pallas_call(
            functools.partial(_qconv_kernel_multik, acc_dtype=acc_dtype),
            out_shape=jax.ShapeDtypeStruct((M_pad, C_pad), jnp.float32),
            grid_spec=pltpu.PrefetchScalarGridSpec(
                num_scalar_prefetch=0,
                grid=(M_pad // tm, C_pad // tc, nk),
                in_specs=[
                    pl.BlockSpec((tm, tk), lambda i, j, k: (i, k)),
                    pl.BlockSpec((tk, tc), lambda i, j, k: (k, j)),
                    pl.BlockSpec((1, tc), lambda i, j, k: (0, j)),
                ],
                out_specs=pl.BlockSpec((tm, tc), lambda i, j, k: (i, j)),
            ),
            compiler_params=pltpu.CompilerParams(
                dimension_semantics=("parallel", "parallel", "arbitrary"),
                vmem_limit_bytes=vmem_limit,
            ),
        )(patches_p, wt_p, sc_p)

    out = out_p[:M, :Cout].reshape(N, Ho, Wo, Cout)      # natural NHWC, no transpose
    if out_layout == "NCHW":
        out = out.transpose(0, 3, 1, 2)
    return out


# --------------------------------------------------------------------------------------
# Pure-JAX references matching the PyTorch forward semantics.
# --------------------------------------------------------------------------------------
def _hwgq_reference(x, *, bit):
    step = HWGQ_STEPS[bit]
    clip_thr = step * float(2 ** bit - 1)
    return jnp.round(jnp.clip(x, 0.0, clip_thr) / step) * step


def _qaconv2d_reference_nhwc(x, weight, s_per_channel, *, bit, stride, padding):
    step = HWGQ_STEPS[bit]
    clip_thr = step * float(2 ** bit - 1)
    thd_neg = float(-(2 ** (bit - 1)))
    thd_pos = float(2 ** (bit - 1) - 1)

    a = jnp.round(jnp.clip(x, 0.0, clip_thr) / step) * step
    s = s_per_channel.reshape(-1, 1, 1, 1)
    wq = jnp.round(jnp.clip(weight / s, thd_neg, thd_pos)) * s

    return jax.lax.conv_general_dilated(
        a, wq,
        window_strides=(stride, stride),
        padding=((padding, padding), (padding, padding)),
        dimension_numbers=("NCHW", "OIHW", "NHWC"),
    )


if __name__ == "__main__":
    bit = 2
    N, Cin, H, W = 2, 4, 16, 16
    Cout, kh, kw = 8, 3, 3
    stride, padding = 1, 1

    key = jax.random.PRNGKey(0)
    kx, kw_key = jax.random.split(key)
    x = jax.random.normal(kx, (N, Cin, H, W), jnp.float32)
    weight = jax.random.normal(kw_key, (Cout, Cin, kh, kw), jnp.float32) * 0.1

    # LsqQuan.init_from(weight), per_channel=True: s = mean(|w|, dims 1..3)*2/sqrt(thd_pos)
    thd_pos = float(2 ** (bit - 1) - 1)
    s_per_channel = jnp.mean(jnp.abs(weight), axis=(1, 2, 3)) * 2.0 / (thd_pos ** 0.5)

    # --- HWGQ module forward (the spec) ---
    hwgq_out = jax.block_until_ready(hwgq_forward(x, bit=bit))
    hwgq_ref = _hwgq_reference(x, bit=bit)
    assert hwgq_out.shape == x.shape, hwgq_out.shape
    assert jnp.allclose(hwgq_out, hwgq_ref, atol=1e-5, rtol=1e-5), float(
        jnp.max(jnp.abs(hwgq_out - hwgq_ref)))

    # --- QAConv2d-style fused forward (HWGQ act + LSQ weight + conv), NHWC output ---
    out = qaconv2d_forward(x, weight, s_per_channel, bit=bit, stride=stride,
                           padding=padding, out_layout="NHWC")
    out = jax.block_until_ready(out)
    ref = _qaconv2d_reference_nhwc(x, weight, s_per_channel, bit=bit,
                                   stride=stride, padding=padding)
    assert out.shape == (N, H, W, Cout), out.shape
    assert jnp.allclose(out, ref, atol=1e-4, rtol=1e-4), float(jnp.max(jnp.abs(out - ref)))

    print("KERNEL_OK")
</pallas_src>

<mosaic_0001>
module attributes {stable_mosaic.version = 11 : i64} {
  func.func @_hwgq_kernel(%arg0: i32, %arg1: memref<8x512xf32, #tpu.memory_space<vmem>>, %arg2: memref<8x512xf32, #tpu.memory_space<vmem>>) attributes {dimension_semantics = [#tpu.dimension_semantics<parallel>], iteration_bounds = array<i64: 1>, scalar_prefetch = 0 : i64, scratch_operands = 0 : i64, tpu.core_type = #tpu.core_type<tc>, window_params = [{transform_indices = @transform_0, window_bounds = array<i64: 8, 512>}, {transform_indices = @transform_1, window_bounds = array<i64: 8, 512>}]} {
    %c0 = arith.constant 0 : index
    %c0_0 = arith.constant 0 : index
    %0 = vector.load %arg1[%c0, %c0_0] : memref<8x512xf32, #tpu.memory_space<vmem>>, vector<8x512xf32>
    %cst = arith.constant 0.000000e+00 : f32
    %cst_1 = arith.constant 1.90691006 : f32
    %1 = vector.broadcast %cst : f32 to vector<8x512xf32>
    %2 = arith.maximumf %1, %0 : vector<8x512xf32>
    %3 = vector.broadcast %cst_1 : f32 to vector<8x512xf32>
    %4 = arith.minimumf %3, %2 : vector<8x512xf32>
    %cst_2 = arith.constant 1.57322574 : f32
    %5 = vector.broadcast %cst_2 : f32 to vector<8x512xf32>
    %6 = arith.mulf %4, %5 : vector<8x512xf32>
    %7 = math.roundeven %6 : vector<8x512xf32>
    %cst_3 = arith.constant 0.635636687 : f32
    %8 = vector.broadcast %cst_3 : f32 to vector<8x512xf32>
    %9 = arith.mulf %7, %8 : vector<8x512xf32>
    %c0_4 = arith.constant 0 : index
    %c0_5 = arith.constant 0 : index
    %10 = vector.load %arg2[%c0_4, %c0_5] : memref<8x512xf32, #tpu.memory_space<vmem>>, vector<8x512xf32>
    tpu.vector_store %arg2[%c0_4, %c0_5], %9 {strides = array<i32>} : memref<8x512xf32, #tpu.memory_space<vmem>>, vector<8x512xf32>,
    return
  }
  func.func @transform_0(%arg0: i32) -> (i32, i32) {
    %c0_i32 = arith.constant 0 : i32
    %c0_i32_0 = arith.constant 0 : i32
    return %arg0, %c0_i32 : i32, i32
  }
  func.func @transform_1(%arg0: i32) -> (i32, i32) {
    %c0_i32 = arith.constant 0 : i32
    %c0_i32_0 = arith.constant 0 : i32
    return %arg0, %c0_i32 : i32, i32
  }
}

</mosaic_0001>

<bundles_post_ra>
// kernel: tpu_custom_call.1
= control target key start
LH: loop header
LB: loop body
LE: loop exit
PB: predicated region body
PF: predicated region fallthrough
CT: control target
= control target key end

     0   :  { %6 = vsyncpa [#allocation3], 0  ;;  %s166_s0 = inlined_call_operand.hbm [shape: f32[8,512], index: 0, kind: input, shape index: {}]   ;;  %s167_s1 = inlined_call_operand.hbm [shape: f32[8,512], index: 1, kind: output, shape index: {}]  }
   0x1   :  { %7 = vsyncpa [#allocation4], 0  ;;  %s142_s6 = smov [#allocation2]  }
   0x2   :  { %s14_s7 = sshll.u32 %s142_s6, 4  ;;  %s15_s7 = int_to_ptr.vmem [resolvable:$true] %s14_s7 }
   0x3   :  { %s106_s8 = scalar_lea.vmem %s15_s7, 512  ;;  %p111_p1 = scmp.lt.s32.totalorder %s15_s7, %s15_s7 }
   0x4   :  { %p107_p0 = scmp.ne.s32.totalorder %s15_s7, %s106_s8  ;;  %p112_p2 = scmp.lt.s32.totalorder %s106_s8, %s106_s8 }
   0x6   :  { %p113_p3 = por %p112_p2, %p111_p1 }
   0x8   :  { %p114_p4 = pnand %p113_p3, %p107_p0 }
   0xa   :  { %117 = shalt.err (!%p114_p4)
}
   0xb   :  { %17 = dma.hbm_to_vmem [thread:$0]  %s166_s0, 512, %s15_s7, [#allocation3]  }
   0xc   :  { %138 = dma.done.wait [#allocation3], 512  }
   0xd   :  { %139 = vsyncadd [#allocation3], 4294966784  ;;  %v21_v0 = vld [vmem:[#allocation2] sm:$0xff]  ;;  %v22_v1 = vld [vmem:[#allocation2 + $0x8] sm:$0xff]  ;;  %s143_s0 = smov [#allocation5]  }
   0xe   :  { %v23_v2 = vld [vmem:[#allocation2 + $0x10] sm:$0xff]  ;;  %v25_v3 = vmax.f32 %v21_v0, 0.0  ;;  %v26_v4 = vmax.f32 %v22_v1, 0.0  ;;  %v24_v6 = vld [vmem:[#allocation2 + $0x18] sm:$0xff]  ;;  %s55_s11 = sshll.u32 %s143_s0, 4  ;;  %s56_s11 = int_to_ptr.vmem [resolvable:$true] %s55_s11 }
   0xf   :  { %v27_v5 = vmax.f32 %v23_v2, 0.0  ;;  %v28_v7 = vmax.f32 %v24_v6, 0.0  ;;  %s118_s12 = scalar_lea.vmem %s56_s11, 512  ;;  %p123_p6 = scmp.lt.s32.totalorder %s56_s11, %s56_s11 }
  0x10   :  { %v29_v8 = vmin.f32 %v25_v3, 1.9069101  ;;  %v30_v9 = vmin.f32 %v26_v4, 1.9069101  ;;  %p119_p5 = scmp.ne.s32.totalorder %s56_s11, %s118_s12  ;;  %p124_p7 = scmp.lt.s32.totalorder %s118_s12, %s118_s12 }
  0x11   :  { %v31_v10 = vmin.f32 %v27_v5, 1.9069101  ;;  %v32_v11 = vmin.f32 %v28_v7, 1.9069101 }
  0x12   :  { %v33_v12 = vmul.f32 1.5732257, %v29_v8  ;;  %v34_v13 = vmul.f32 1.5732257, %v30_v9  ;;  %p125_p8 = por %p124_p7, %p123_p6 }
  0x13   :  { %v35_v14 = vmul.f32 1.5732257, %v31_v10  ;;  %v36_v18 = vmul.f32 1.5732257, %v32_v11 }
  0x14   :  { %v64_v15 = vand.u32 2147483647, %v33_v12  ;;  %v66_v16 = vcvt.f32.s32 %v33_v12  ;;  %v72_v17 = vand.u32 2147483647, %v34_v13  ;;  %v74_v19 = vcvt.f32.s32 %v34_v13  ;;  %p126_p9 = pnand %p125_p8, %p119_p5 }
  0x15   :  { %v82_v20 = vcvt.f32.s32 %v35_v14  ;;  %v69_v22 = vand.u32 2147483648, %v33_v12  ;;  %v80_v23 = vand.u32 2147483647, %v35_v14  ;;  %v77_v25 = vand.u32 2147483648, %v34_v13 }
  0x16   :  { %v67_v21 = vcvt.s32.f32 %v66_v16  ;;  %v75_v24 = vcvt.s32.f32 %v74_v19  ;;  %v85_v27 = vand.u32 2147483648, %v35_v14  ;;  %vm65_vm0 = vcmp.lt.f32.partialorder %v64_v15, 8388608.0 }
  0x17   :  { %v83_v26 = vcvt.s32.f32 %v82_v20  ;;  %vm157_vm1 = vcmp.lt.f32.partialorder %v72_v17, 8388608.0  ;;  %v90_v30 = vcvt.f32.s32 %v36_v18  ;;  %v88_v33 = vand.u32 2147483647, %v36_v18 }
  0x18   :  { %v68_v28 = vand.u32 2147483647, %v67_v21  ;;  %v76_v31 = vand.u32 2147483647, %v75_v24  ;;  %vm81_vm2 = vcmp.lt.f32.partialorder %v80_v23, 8388608.0  ;;  %v93_v36 = vand.u32 2147483648, %v36_v18 }
  0x19   :  { %v84_v32 = vand.u32 2147483647, %v83_v26  ;;  %v91_v35 = vcvt.s32.f32 %v90_v30  ;;  %vm89_vm3 = vcmp.lt.f32.partialorder %v88_v33, 8388608.0 }
  0x1a   :  { %v70_v34 = vor.u32 %v69_v22, %v68_v28  ;;  %v78_v37 = vor.u32 %v77_v25, %v76_v31 }
  0x1b   :  { %v86_v38 = vor.u32 %v85_v27, %v84_v32  ;;  %v92_v40 = vand.u32 2147483647, %v91_v35 }
  0x1c   :  { %v71_v39 = vsel %vm65_vm0, %v70_v34, %v33_v12  ;;  %v79_v42 = vsel %vm157_vm1, %v78_v37, %v34_v13 }
  0x1d   :  { %v41_v41 = vmul.f32 0.6356367, %v71_v39  ;;  %v87_v43 = vsel %vm81_vm2, %v86_v38, %v35_v14  ;;  %v42_v44 = vmul.f32 0.6356367, %v79_v42  ;;  %v94_v46 = vor.u32 %v93_v36, %v92_v40 }
  0x1e   :  { %v43_v45 = vmul.f32 0.6356367, %v87_v43 }
  0x1f   :  { %45 = vst [vmem:[#allocation5] sm:$0xff] %v41_v41  ;;  %46 = vst [vmem:[#allocation5 + $0x8] sm:$0xff] %v42_v44  ;;  %v95_v47 = vsel %vm89_vm3, %v94_v46, %v36_v18 }
  0x20   :  { %47 = vst [vmem:[#allocation5 + $0x10] sm:$0xff] %v43_v45  ;;  %v44_v48 = vmul.f32 0.6356367, %v95_v47 }
  0x22   :  { %48 = vst [vmem:[#allocation5 + $0x18] sm:$0xff] %v44_v48 }
  0x23   :  { %129 = shalt.err (!%p126_p9)
}
  0x24   :  { %58 = dma.vmem_to_hbm [thread:$0]  %s56_s11, 512, %s167_s1, [#allocation4]  }
  0x25   :  { %140 = dma.done.wait [#allocation4], 512  }
  0x26   :  { %141 = vsyncadd [#allocation4], 4294966784 }
  0x27   :  { %62 = vsyncpa [#allocation3], 1 }
  0x28   :  { %63 = vsyncpa [#allocation4], 1 }

</bundles_post_ra>
